<compile_context>
chip_gen: v7x
topology: tpu7x:2x2x1
jax: 0.10.0
libtpu: 0.0.40
codegen_flags: <defaults>
</compile_context>

<pallas_src>
import functools

import jax
import jax.numpy as jnp
import numpy as np
from jax.experimental import pallas as pl
from jax.experimental.pallas import tpu as pltpu


def _dual_focal_kernel(x_ref, t_ref, out_ref, *, gamma, eps, input_is_softmax,
                       needs_mask):
    p = pl.program_id(2)

    @pl.when(p == 0)
    def _init():
        out_ref[...] = jnp.zeros_like(out_ref)

    x = x_ref[...].astype(jnp.float32)      # (C, Rt, 128): classes on slab axis
    t = t_ref[...].astype(jnp.int32)        # (Rt, 128) int targets

    # one-hot over the class (leading) axis; out-of-range targets never match.
    # TODO(synk): targets with an ignore-index (e.g. 255 / -1) silently get zero
    # loss here; the reference module has no ignore handling (torch.gather would
    # error on them), so behavior diverges only for invalid inputs.
    cls_iota = jax.lax.broadcasted_iota(jnp.int32, x.shape, 0)
    onehot = cls_iota == t[None, :, :]                          # (C, Rt, 128)

    if input_is_softmax:
        prob = jnp.clip(x, eps, 1.0 - eps)                      # (C, Rt, 128)
        p_k = jnp.sum(jnp.where(onehot, prob, 0.0), axis=0)     # (Rt, 128)
        logp_k = jnp.log(p_k)
        if gamma == 0:
            loss = -logp_k
        else:
            p_j = jnp.max(jnp.where(prob < p_k[None, :, :], prob, 0.0), axis=0)
            base = jnp.maximum(1.0 - p_k + p_j, 0.0)
            loss = -(base ** gamma) * logp_k
    else:
        # z-space: never materialize logp over the full (C, Rt, 128) block.
        xmax = jnp.max(x, axis=0)                               # (Rt, 128)
        z = x - xmax[None, :, :]                                # (C, Rt, 128)
        lse = jnp.log(jnp.sum(jnp.exp(z), axis=0))              # (Rt, 128)
        z_k = jnp.sum(jnp.where(onehot, z, 0.0), axis=0)        # (Rt, 128)
        logp_k = z_k - lse
        if gamma == 0:
            # (1 - p_k + p_j) ** 0 == 1: p_k / p_j are dead, skip them.
            loss = -logp_k
        else:
            p_k = jnp.exp(logp_k)
            # p_j: largest prob strictly below p_k  <=>  largest z strictly
            # below z_k (exp is monotone); exp(-inf) == 0 when none qualify.
            z_j = jnp.max(jnp.where(z < z_k[None, :, :], z, -jnp.inf), axis=0)
            p_j = jnp.exp(z_j - lse)
            base = jnp.maximum(1.0 - p_k + p_j, 0.0)
            loss = -(base ** gamma) * logp_k

    if needs_mask:
        # Padded pixels carry the sentinel target -1 -> zero contribution.
        loss = jnp.where(t >= 0, loss, 0.0)

    # Reduce the tile to a lane-dense (1, 128) partial; accumulate into the
    # resident output block (no wide accumulator / store traffic).
    out_ref[...] += jnp.sum(loss, axis=0, keepdims=True)


def dual_focal_loss(logits_nchw, target_nhw, *, gamma=0, size_average=False,
                    input_is_softmax=False):
    """Pallas TPU implementation of DualFocalLoss.forward (NCHW logits)."""
    eps = 1e-09
    TARGET_BLOCK_BYTES = 6 * 1024 * 1024   # logits bytes per (C, Rt, 128) block

    N, C = int(logits_nchw.shape[0]), int(logits_nchw.shape[1])
    HW = int(np.prod(logits_nchw.shape[2:])) if logits_nchw.ndim > 2 else 1
    M = N * HW

    x3 = logits_nchw.reshape(N, C, HW)
    t2 = target_nhw.reshape(N, HW)

    bytes_x = jnp.dtype(logits_nchw.dtype).itemsize
    # --- tile selection: rows of 128 pixels, sized by bytes ------------------
    R0 = pl.cdiv(HW, 128)                       # rows after 128-lane rounding
    rows_budget = max(8, (TARGET_BLOCK_BYTES // (C * 128 * bytes_x)) // 8 * 8)

    if R0 <= rows_budget:
        R = R0
        tile_rows = R0                          # full extent -> always legal
    else:
        R = R0 if R0 % 8 == 0 else pl.cdiv(R0, 8) * 8
        tile_rows = 8
        d = 8
        while d <= min(R, rows_budget):         # largest 8-multiple divisor
            if R % d == 0:
                tile_rows = d
            d += 8

    HW_pad = R * 128
    needs_mask = HW_pad != HW

    if needs_mask:
        # Rare path (HW not a multiple of 128): pad, targets get sentinel -1.
        x3 = jnp.pad(x3, ((0, 0), (0, 0), (0, HW_pad - HW)))
        t2 = jnp.pad(t2.astype(jnp.int32), ((0, 0), (0, HW_pad - HW)),
                     constant_values=-1)
    elif not jnp.issubdtype(t2.dtype, jnp.integer):
        t2 = t2.astype(jnp.int32)

    x4 = x3.reshape(N, C, R, 128)               # free reshapes (no HBM copy
    t3 = t2.reshape(N, R, 128)                  # when needs_mask is False)

    n_row_tiles = R // tile_rows
    # Split pixel tiles across an extra parallel axis so both v7x TensorCores
    # have work even when N is 1 / odd (harmless elsewhere).
    psplit = 2 if (n_row_tiles >= 2 and n_row_tiles % 2 == 0) else 1
    n_inner = n_row_tiles // psplit

    kernel = functools.partial(
        _dual_focal_kernel, gamma=gamma, eps=eps,
        input_is_softmax=input_is_softmax, needs_mask=needs_mask)

    out = pl.pallas_call(
        kernel,
        out_shape=jax.ShapeDtypeStruct((N, psplit, 128), jnp.float32),
        grid_spec=pltpu.PrefetchScalarGridSpec(
            num_scalar_prefetch=0,
            grid=(N, psplit, n_inner),
            in_specs=[
                pl.BlockSpec((None, C, tile_rows, 128),
                             lambda n, h, p: (n, 0, h * n_inner + p, 0)),
                pl.BlockSpec((None, tile_rows, 128),
                             lambda n, h, p: (n, h * n_inner + p, 0)),
            ],
            out_specs=pl.BlockSpec((None, 1, 128), lambda n, h, p: (n, h, 0)),
        ),
        compiler_params=pltpu.CompilerParams(
            dimension_semantics=("parallel", "parallel", "arbitrary"),
            vmem_limit_bytes=32 * 1024 * 1024),
    )(x4, t3)

    loss_sum = jnp.sum(out)                     # per-(batch, half) partials
    if size_average:
        return loss_sum / jnp.float32(M)
    return loss_sum


def _reference(logits_nchw, target_nhw, gamma=0, size_average=False,
               input_is_softmax=False, eps=1e-09):
    """Plain-JAX mirror of the PyTorch DualFocalLoss.forward."""
    N, C = logits_nchw.shape[0], logits_nchw.shape[1]
    x = jnp.transpose(logits_nchw.reshape(N, C, -1), (0, 2, 1)).reshape(-1, C)
    t = target_nhw.reshape(-1)
    if input_is_softmax:
        logp = jnp.log(jnp.clip(x, eps, 1.0 - eps))
    else:
        logp = jax.nn.log_softmax(x, axis=1)
    probs = jnp.exp(logp)
    logp_k = jnp.take_along_axis(logp, t[:, None], axis=1)[:, 0]
    p_k = jnp.exp(logp_k)
    mask = (probs < p_k[:, None]).astype(probs.dtype)
    p_j = jnp.max(mask * probs, axis=1)
    loss = -1.0 * (1.0 - p_k + p_j) ** gamma * logp_k
    return jnp.mean(loss) if size_average else jnp.sum(loss)


if __name__ == "__main__":
    key = jax.random.PRNGKey(0)
    k1, k2, k3, k4, k5 = jax.random.split(key, 5)

    # Case 1: module defaults (gamma=0, sum reduction), NCHW logits.
    N, C, H, W = 2, 4, 16, 16
    logits = jax.random.normal(k1, (N, C, H, W), dtype=jnp.float32)
    target = jax.random.randint(k2, (N, H, W), 0, C, dtype=jnp.int32)
    out = jax.block_until_ready(dual_focal_loss(logits, target))
    ref = _reference(logits, target)
    np.testing.assert_allclose(np.asarray(out), np.asarray(ref),
                               rtol=1e-5, atol=1e-4)

    # Case 2: gamma != 0 (p_j path) with mean reduction.
    out2 = jax.block_until_ready(
        dual_focal_loss(logits, target, gamma=2, size_average=True))
    ref2 = _reference(logits, target, gamma=2, size_average=True)
    np.testing.assert_allclose(np.asarray(out2), np.asarray(ref2),
                               rtol=1e-5, atol=1e-5)

    # Case 3: inputs are already softmax probabilities.
    probs = jax.nn.softmax(
        jax.random.normal(k3, (N, C, H, W), dtype=jnp.float32), axis=1)
    out3 = jax.block_until_ready(
        dual_focal_loss(probs, target, gamma=2, input_is_softmax=True))
    ref3 = _reference(probs, target, gamma=2, input_is_softmax=True)
    np.testing.assert_allclose(np.asarray(out3), np.asarray(ref3),
                               rtol=1e-5, atol=1e-4)

    # Case 4: spatial size not a multiple of 128 (pad + sentinel-mask path).
    N2, C2, H2, W2 = 2, 3, 5, 7
    logits4 = jax.random.normal(k4, (N2, C2, H2, W2), dtype=jnp.float32)
    target4 = jax.random.randint(k5, (N2, H2, W2), 0, C2, dtype=jnp.int32)
    out4 = jax.block_until_ready(dual_focal_loss(logits4, target4, gamma=2))
    ref4 = _reference(logits4, target4, gamma=2)
    np.testing.assert_allclose(np.asarray(out4), np.asarray(ref4),
                               rtol=1e-5, atol=1e-4)

    print("KERNEL_OK")
</pallas_src>

<mosaic_0001>
module attributes {stable_mosaic.version = 11 : i64} {
  func.func @_dual_focal_kernel(%arg0: i32, %arg1: i32, %arg2: i32, %arg3: memref<1x4x2x128xf32, #tpu.memory_space<vmem>>, %arg4: memref<1x2x128xi32, #tpu.memory_space<vmem>>, %arg5: memref<1x1x128xf32, #tpu.memory_space<vmem>>) attributes {dimension_semantics = [#tpu.dimension_semantics<parallel>, #tpu.dimension_semantics<parallel>, #tpu.dimension_semantics<arbitrary>], iteration_bounds = array<i64: 2, 1, 1>, scalar_prefetch = 0 : i64, scratch_operands = 0 : i64, tpu.core_type = #tpu.core_type<tc>, window_params = [{transform_indices = @transform_0, window_bounds = array<i64: 1, 4, 2, 128>}, {transform_indices = @transform_1, window_bounds = array<i64: 1, 2, 128>}, {transform_indices = @transform_2, window_bounds = array<i64: 1, 1, 128>}]} {
    %c0_i32 = arith.constant 0 : i32
    %0 = arith.cmpi eq, %arg2, %c0_i32 : i32
    %1 = arith.extui %0 : i1 to i32
    %c0_i32_0 = arith.constant 0 : i32
    %2 = arith.cmpi ne, %1, %c0_i32_0 : i32
    scf.if %2 {
      %cst_18 = arith.constant 0.000000e+00 : f32
      %32 = vector.broadcast %cst_18 : f32 to vector<1x128xf32>
      %c0_19 = arith.constant 0 : index
      %c0_20 = arith.constant 0 : index
      %c0_21 = arith.constant 0 : index
      %33 = vector.load %arg5[%c0_19, %c0_20, %c0_21] : memref<1x1x128xf32, #tpu.memory_space<vmem>>, vector<1x1x128xf32>
      %34 = vector.shape_cast %33 : vector<1x1x128xf32> to vector<1x128xf32>
      %35 = vector.shape_cast %32 : vector<1x128xf32> to vector<1x1x128xf32>
      tpu.vector_store %arg5[%c0_19, %c0_20, %c0_21], %35 {strides = array<i32>} : memref<1x1x128xf32, #tpu.memory_space<vmem>>, vector<1x1x128xf32>,
    } else {
    }
    %c0 = arith.constant 0 : index
    %c0_1 = arith.constant 0 : index
    %c0_2 = arith.constant 0 : index
    %c0_3 = arith.constant 0 : index
    %3 = vector.load %arg3[%c0, %c0_1, %c0_2, %c0_3] : memref<1x4x2x128xf32, #tpu.memory_space<vmem>>, vector<1x4x2x128xf32>
    %4 = vector.shape_cast %3 : vector<1x4x2x128xf32> to vector<4x2x128xf32>
    %c0_4 = arith.constant 0 : index
    %c0_5 = arith.constant 0 : index
    %c0_6 = arith.constant 0 : index
    %5 = vector.load %arg4[%c0_4, %c0_5, %c0_6] : memref<1x2x128xi32, #tpu.memory_space<vmem>>, vector<1x2x128xi32>
    %6 = vector.shape_cast %5 : vector<1x2x128xi32> to vector<2x128xi32>
    %7 = tpu.iota {dimensions = array<i32: 0>} : vector<4x2x128xi32>
    %8 = vector.shape_cast %6 : vector<2x128xi32> to vector<1x2x128xi32>
    %9 = vector.broadcast %8 : vector<1x2x128xi32> to vector<4x2x128xi32>
    %10 = arith.cmpi eq, %7, %9 : vector<4x2x128xi32>
    %cst = arith.constant dense<0xFF800000> : vector<2x128xf32>
    %11 = vector.multi_reduction <maximumf>, %4, %cst [0] : vector<4x2x128xf32> to vector<2x128xf32>
    %12 = vector.shape_cast %11 : vector<2x128xf32> to vector<1x2x128xf32>
    %13 = vector.broadcast %12 : vector<1x2x128xf32> to vector<4x2x128xf32>
    %14 = arith.subf %4, %13 : vector<4x2x128xf32>
    %15 = math.exp %14 : vector<4x2x128xf32>
    %cst_7 = arith.constant dense<0.000000e+00> : vector<2x128xf32>
    %16 = vector.multi_reduction <add>, %15, %cst_7 [0] : vector<4x2x128xf32> to vector<2x128xf32>
    %17 = math.log %16 : vector<2x128xf32>
    %cst_8 = arith.constant 0.000000e+00 : f32
    %18 = vector.broadcast %cst_8 : f32 to vector<4x2x128xf32>
    %19 = arith.select %10, %14, %18 : vector<4x2x128xi1>, vector<4x2x128xf32>
    %cst_9 = arith.constant dense<0.000000e+00> : vector<2x128xf32>
    %20 = vector.multi_reduction <add>, %19, %cst_9 [0] : vector<4x2x128xf32> to vector<2x128xf32>
    %21 = arith.subf %20, %17 : vector<2x128xf32>
    %cst_10 = arith.constant 0.000000e+00 : f32
    %22 = vector.broadcast %cst_10 : f32 to vector<2x128xf32>
    %23 = arith.subf %22, %21 : vector<2x128xf32>
    %c0_11 = arith.constant 0 : index
    %c0_12 = arith.constant 0 : index
    %c0_13 = arith.constant 0 : index
    %24 = vector.load %arg5[%c0_11, %c0_12, %c0_13] : memref<1x1x128xf32, #tpu.memory_space<vmem>>, vector<1x1x128xf32>
    %25 = vector.shape_cast %24 : vector<1x1x128xf32> to vector<1x128xf32>
    %cst_14 = arith.constant dense<0.000000e+00> : vector<128xf32>
    %26 = vector.multi_reduction <add>, %23, %cst_14 [0] : vector<2x128xf32> to vector<128xf32>
    %27 = vector.shape_cast %26 : vector<128xf32> to vector<1x128xf32>
    %28 = arith.addf %25, %27 : vector<1x128xf32>
    %c0_15 = arith.constant 0 : index
    %c0_16 = arith.constant 0 : index
    %c0_17 = arith.constant 0 : index
    %29 = vector.load %arg5[%c0_15, %c0_16, %c0_17] : memref<1x1x128xf32, #tpu.memory_space<vmem>>, vector<1x1x128xf32>
    %30 = vector.shape_cast %29 : vector<1x1x128xf32> to vector<1x128xf32>
    %31 = vector.shape_cast %28 : vector<1x128xf32> to vector<1x1x128xf32>
    tpu.vector_store %arg5[%c0_15, %c0_16, %c0_17], %31 {strides = array<i32>} : memref<1x1x128xf32, #tpu.memory_space<vmem>>, vector<1x1x128xf32>,
    return
  }
  func.func @transform_0(%arg0: i32, %arg1: i32, %arg2: i32) -> (i32, i32, i32, i32) {
    %c1_i32 = arith.constant 1 : i32
    %0 = arith.muli %arg1, %c1_i32 : i32
    %1 = arith.addi %0, %arg2 : i32
    %c0_i32 = arith.constant 0 : i32
    %c0_i32_0 = arith.constant 0 : i32
    %c0_i32_1 = arith.constant 0 : i32
    return %arg0, %c0_i32, %1, %c0_i32_0 : i32, i32, i32, i32
  }
  func.func @transform_1(%arg0: i32, %arg1: i32, %arg2: i32) -> (i32, i32, i32) {
    %c1_i32 = arith.constant 1 : i32
    %0 = arith.muli %arg1, %c1_i32 : i32
    %1 = arith.addi %0, %arg2 : i32
    %c0_i32 = arith.constant 0 : i32
    %c0_i32_0 = arith.constant 0 : i32
    return %arg0, %1, %c0_i32 : i32, i32, i32
  }
  func.func @transform_2(%arg0: i32, %arg1: i32, %arg2: i32) -> (i32, i32, i32) {
    %c0_i32 = arith.constant 0 : i32
    %c0_i32_0 = arith.constant 0 : i32
    return %arg0, %arg1, %c0_i32 : i32, i32, i32
  }
}

</mosaic_0001>

<bundles_post_ra>
// kernel: tpu_custom_call.1
= control target key start
LH: loop header
LB: loop body
LE: loop exit
PB: predicated region body
PF: predicated region fallthrough
CT: control target
= control target key end

     0   :  { %7 = vsyncpa [#allocation3], 0  ;;  %s919_s0 = inlined_call_operand.hbm [shape: f32[2,4,2,128], index: 0, kind: input, shape index: {}]   ;;  %s920_s1 = inlined_call_operand.hbm [shape: s32[2,2,128], index: 1, kind: input, shape index: {}]   ;;  %s921_s2 = inlined_call_operand.hbm [shape: f32[2,1,128], index: 2, kind: output, shape index: {}]  }
   0x1   :  { %9 = vsyncpa [#allocation3 + $0x1], 0 }
   0x2   :  { %10 = vsyncpa [#allocation6], 0 }
   0x3   :  { %12 = vsyncpa [#allocation6 + $0x1], 0 }
   0x4   :  { %13 = vsyncpa [#allocation4], 0 }
   0x5   :  { %15 = vsyncpa [#allocation4 + $0x1], 0  ;;  %s684_s9 = smov 0   ;;  %s686_s10 = smov 0  }
   0x6   :  { %s688_s11 = smov 0   ;;  %s690_s12 = smov 0  }
   0x7   :  { %s692_s13 = smov 0   ;;  %s694_s14 = smov 0  }
   0x8 LB: > { %s419_s15 = sadd.s32 4294967295, %s661_s14   ;;  %s420_s16 = sadd.s32 4294967294, %s661_s14   ;;  %s661_s14 = sphi %s694_s14, %s21_s14   ;;  %s657_s13 = sphi %s692_s13, %s940_s13   ;;  %s653_s12 = sphi %s690_s12, %s939_s12   ;;  %s649_s11 = sphi %s688_s11, %s938_s11   ;;  %s645_s10 = sphi %s686_s10, %s937_s10   ;;  %s641_s9 = sphi %s684_s9, %s936_s9  }
   0x9   : > { %s40_s17 = sadd.s32 1, %s657_s13  ;;  %s51_s18 = sadd.s32 1, %s649_s11 }
   0xa   : > { %p42_p0 = scmp.ge.s32.totalorder %s40_s17, 2  ;;  %p58_p1 = scmp.ne.s32.totalorder %s649_s11, %s645_s10 }
   0xb   : > { %p59_p2 = scmp.eq.s32.totalorder %s661_s14, 0  ;;  %p64_p3 = scmp.ne.s32.totalorder %s645_s10, %s641_s9 }
   0xc   : > { %s942_s17 = smov (%p42_p0, %s40_s17), 0  ;;  %p65_p5 = scmp.eq.s32.totalorder %s419_s15, 0 }
   0xd   : > { %p725_p4 = por %p59_p2, %p58_p1  ;;  %s46_s20 = ssub.s32 %s657_s13, %s942_s17 }
   0xe   : > { %p120_p6 = scmp.eq.s32.totalorder %s419_s15, 1  ;;  %p49_p7 = scmp.eq.s32.totalorder %s46_s20, 0 }
   0xf   : > { %p731_p8 = por %p65_p5, %p64_p3  ;;  %p126_p10 = scmp.eq.s32.totalorder %s420_s16, 1 }
  0x10   : > { %p735_p9 = por %p120_p6, %p58_p1  ;;  %p452_p13 = scmp.lt.s32.totalorder %s661_s14, 2 }
  0x11   : > { %s925_s21 = scalar_select %p731_p8, 1, 0 }
  0x12   : > { %s926_s22 = scalar_select %p735_p9, 1, 0 }
  0x13   : > { %s740_s23 = scalar_select %p49_p7, %s649_s11, %s51_s18  }
  0x14   : > { %p742_p11 = por %p126_p10, %p64_p3  ;;  %s749_s25 = sand.u32 1, %s649_s11  }
  0x15   : > { %s423_s26 = sshll.u32 %s749_s25, 3  ;;  %s434_s27 = sshll.u32 %s657_s13, 7 }
  0x16   : > { %s927_s24 = scalar_select %p742_p11, 1, 0 }
  0x17   : > { %s756_s30 = scalar_lea.hbm %s919_s0, %s434_s27  ;;  %s150_s3 = scalar_lea.vmem [#allocation2], %s423_s26 }
  0x18   : > { %s159_s4 = sshll.u32 %s150_s3, 4  ;;  %p762_p0 = pnand %p452_p13, %p725_p4  ;;  %s758_s4 = int_to_ptr.vmem [resolvable:$true] %s159_s4 }
  0x19   : > { %s147_s6 = scalar_lea.sflag [#allocation3], %s749_s25  ;;  %s515_s7 = scalar_lea.hbm %s756_s30, 128 }
  0x1a   : > { %p516_p2 = scmp.ne.s32.totalorder %s756_s30, %s515_s7  ;;  %p517_p3 = pneg %p762_p0 }
  0x1b   : > { %s520_s16 = scalar_lea.hbm %s919_s0, 256  ;;  %p521_p4 = scmp.lt.u32.totalorder %s756_s30, %s919_s0 }
  0x1c   : > { %p518_p5 = pnand %p517_p3, %p516_p2  ;;  %p522_p7 = scmp.lt.u32.totalorder %s520_s16, %s515_s7 }
  0x1d   : > { %p524_p13 = scmp.lt.u32.totalorder %s515_s7, %s756_s30 }
  0x1e   : > { %p519_p6 = pneg %p518_p5  ;;  %p523_p10 = por %p522_p7, %p521_p4 }
  0x20   : > { %p525_p12 = por %p524_p13, %p523_p10 }
  0x22   : > { %p526_p1 = pnand %p525_p12, %p519_p6 }
  0x24   : > { %529 = shalt.err (!%p526_p1)
}
  0x25   : > { %s530_s20 = scalar_lea.vmem %s758_s4, 128  ;;  %s663_s26 = smov [#allocation2]  }
  0x26   : > { %p531_p2 = scmp.ne.s32.totalorder %s758_s4, %s530_s20  ;;  %s535_s27 = sshll.u32 %s663_s26, 4  ;;  %s536_s27 = int_to_ptr.vmem [resolvable:$false] %s535_s27 }
  0x27   : > { %s537_s28 = scalar_lea.vmem %s536_s27, 256  ;;  %p538_p9 = scmp.lt.s32.totalorder %s758_s4, %s536_s27 }
  0x28   : > { %p533_p5 = pnand %p531_p2, %p517_p3  ;;  %p539_p4 = scmp.lt.s32.totalorder %s537_s28, %s530_s20 }
  0x2a   : > { %p534_p11 = pneg %p533_p5  ;;  %p540_p7 = por %p539_p4, %p538_p9 }
  0x2c   : > { %p541_p10 = pnand %p540_p7, %p534_p11 }
  0x2e   : > { %544 = shalt.err (!%p541_p10)
}
  0x2f   : > { %s664_s29 = smov 32   ;;  %s665_s3 = smov 2  }
  0x30   : > { %444 = dma.hbm_to_vmem [thread:$0]  (!%p762_p0), %s756_s30, 128, %s758_s4, %s147_s6, %s664_s29, %s664_s29, %s665_s3  }
  0x31   : > { %p187_p12 = scmp.lt.s32.totalorder %s661_s14, 3  ;;  %s426_s7 = sshll.u32 %s749_s25, 1 }
  0x32   : > { %s427_s8 = sshll.u32 %s657_s13, 5  ;;  %p929_p9 = scmp.ge.s32.totalorder %s661_s14, 1 }
  0x33   : > { %s807_s19 = scalar_lea.hbm %s920_s1, %s427_s8  ;;  %s173_s20 = scalar_lea.vmem [#allocation5], %s426_s7 }
  0x34   : > { %p800_p11 = pnand %p929_p9, %p187_p12  ;;  %s182_s26 = sshll.u32 %s173_s20, 4  ;;  %s183_s26 = int_to_ptr.vmem [resolvable:$true] %s182_s26 }
  0x35   : > { %s170_s30 = scalar_lea.sflag [#allocation6], %s749_s25  ;;  %s545_s4 = scalar_lea.hbm %s807_s19, 32 }
  0x36   : > { %s930_s15 = scalar_select %p800_p11, 1, 0 }
  0x37   : > { %p546_p1 = scmp.ne.s32.totalorder %s807_s19, %s545_s4  ;;  %s550_s28 = scalar_lea.hbm %s920_s1, 64 }
  0x38   : > { %p551_p2 = scmp.lt.u32.totalorder %s807_s19, %s920_s1  ;;  %p552_p5 = scmp.lt.u32.totalorder %s550_s28, %s545_s4 }
  0x39   : > { %p548_p6 = pnand %p546_p1, %p517_p3  ;;  %p554_p7 = scmp.lt.u32.totalorder %s545_s4, %s807_s19 }
  0x3a   : > { %p553_p4 = por %p552_p5, %p551_p2 }
  0x3b   : > { %p549_p13 = pneg %p548_p6 }
  0x3c   : > { %p555_p10 = por %p554_p7, %p553_p4 }
  0x3e   : > { %p556_p12 = pnand %p555_p10, %p549_p13 }
  0x40   : > { %559 = shalt.err (!%p556_p12)
}
  0x41   : > { %s560_s25 = scalar_lea.vmem %s183_s26, 32  ;;  %s666_s7 = smov [#allocation5]  }
  0x42   : > { %p561_p9 = scmp.ne.s32.totalorder %s183_s26, %s560_s25  ;;  %s565_s8 = sshll.u32 %s666_s7, 4  ;;  %s566_s8 = int_to_ptr.vmem [resolvable:$false] %s565_s8 }
  0x43   : > { %s567_s16 = scalar_lea.vmem %s566_s8, 64  ;;  %p568_p8 = scmp.lt.s32.totalorder %s183_s26, %s566_s8 }
  0x44   : > { %p563_p1 = pnand %p561_p9, %p517_p3  ;;  %p569_p11 = scmp.lt.s32.totalorder %s567_s16, %s560_s25 }
  0x46   : > { %p564_p6 = pneg %p563_p1  ;;  %p570_p2 = por %p569_p11, %p568_p8 }
  0x48   : > { %p571_p5 = pnand %p570_p2, %p564_p6 }
  0x4a   : > { %574 = shalt.err (!%p571_p5)
}
  0x4b   : > { %447 = dma.hbm_to_vmem [thread:$0]  (!%p762_p0), %s807_s19, 32, %s183_s26, %s170_s30  }
  0x4c   : > { %p931_p13 = scmp.ne.s32.totalorder %s930_s15, 0 }
  0x4d   : > { %s832_s18 = sand.u32 (!%p931_p13), 1, %s645_s10   ;;  %p932_p3 = scmp.ne.s32.totalorder (!%p931_p13), %s925_s21, 0 }
  0x4e   : > { %191 = sbr.rel (%p931_p13) target bundleno = 166 (0xa6), region = 28  ;;  %s429_s20 = sshll.u32 (!%p931_p13), %s832_s18, 3 }
  0x4f   : > { %s194_s4 = scalar_lea.sflag (!%p931_p13), [#allocation3], %s832_s18  ;;  %s197_s6 = scalar_lea.vmem (!%p931_p13), [#allocation2], %s429_s20 }
  0x55   : > { %628 = dma.done.wait (%p932_p3), %s194_s4, 128  }
  0x56   : > { %630 = vsyncadd (%p932_p3), %s194_s4, 4294967168  ;;  %s430_s5 = sshll.u32 %s832_s18, 1  ;;  %s203_s15 = scalar_lea.sflag [#allocation6], %s832_s18 }
  0x57   : > { %s206_s19 = scalar_lea.vmem [#allocation5], %s430_s5 }
  0x58   : > { %632 = dma.done.wait (%p932_p3), %s203_s15, 32  }
  0x59   : > { %634 = vsyncadd (%p932_p3), %s203_s15, 4294967264  ;;  %s847_s26 = scalar_lea.vmem [#allocation7], %s832_s18  ;;  %v667_v0 = vmov 0.0   ;;  %vm247_vm0 = vcmask 1041408   ;;  %v238_v1 = vld [vmem:[%s197_s6] sm:$0x3] }
  0x5a   : > { %237 = vst [vmem:[%s847_s26] sm:$0x1] %v667_v0  ;;  %v239_v2 = vld [vmem:[%s197_s6 + $0x2] sm:$0x3]  ;;  %v240_v3 = vld [vmem:[%s197_s6 + $0x4] sm:$0x3]  ;;  %v248_v5 = vsel %vm247_vm0, %v238_v1, -inf }
  0x5b   : > { %v241_v4 = vld [vmem:[%s197_s6 + $0x6] sm:$0x3]  ;;  %v249_v6 = vsel %vm247_vm0, %v239_v2, -inf  ;;  %v250_v7 = vsel %vm247_vm0, %v240_v3, -inf  ;;  %v242_v20 = vld [vmem:[%s206_s19] sm:$0x3] }
  0x5c   : > { %v251_v8 = vsel %vm247_vm0, %v241_v4, -inf  ;;  %v252_v9 = vmax.f32 %v248_v5, %v249_v6  ;;  %vm243_vm1 = vcmp.eq.s32.totalorder %v242_v20, 0  ;;  %vm244_vm2 = vcmp.eq.s32.totalorder %v242_v20, 1  ;;  %s431_s21 = sshll.u32 %s653_s12, 4  ;;  %s313_s30 = sshll.u32 %s847_s26, 4  ;;  %s871_s30 = int_to_ptr.vmem [resolvable:$true] %s313_s30 }
  0x5d   : > { %v253_v10 = vmax.f32 %v250_v7, %v251_v8  ;;  %vm245_vm3 = vcmp.eq.s32.totalorder %v242_v20, 2  ;;  %vm246_vm4 = vcmp.eq.s32.totalorder %v242_v20, 3  ;;  %s869_s29 = scalar_lea.hbm %s921_s2, %s431_s21  ;;  %s300_s3 = scalar_lea.sflag [#allocation4], %s832_s18 }
  0x5e   : > { %s575_s25 = scalar_lea.vmem %s871_s30, 16  ;;  %p933_p0 = scmp.ne.s32.totalorder %s926_s22, 0 }
  0x5f   : > { %v254_v11 = vmax.f32 %v252_v9, %v253_v10  ;;  %p576_p8 = scmp.ne.s32.totalorder %s871_s30, %s575_s25  ;;  %s668_s12 = smov [#allocation7]  }
  0x60   : > { %s579_s7 = sshll.u32 %s668_s12, 4  ;;  %s580_s7 = int_to_ptr.vmem [resolvable:$false] %s579_s7 }
  0x61   : > { %v255_v12 = vsub.f32 %v238_v1, %v254_v11  ;;  %v256_v13 = vsub.f32 %v239_v2, %v254_v11  ;;  %v257_v14 = vsub.f32 %v240_v3, %v254_v11  ;;  %v258_v15 = vsub.f32 %v241_v4, %v254_v11  ;;  %v289_v53 = vld [vmem:[%s847_s26] sm:$0x1]  ;;  %p577_p11 = pnand %p576_p8, %p933_p0  ;;  %s581_s8 = scalar_lea.vmem %s580_s7, 32 }
  0x62   : > { %p582_p7 = scmp.lt.s32.totalorder %s871_s30, %s580_s7  ;;  %p583_p10 = scmp.lt.s32.totalorder %s581_s8, %s575_s25 }
  0x63   : > { %v259_v16 = vmul.f32 1.442695, %v255_v12  ;;  %v261_v17 = vmul.f32 1.442695, %v256_v13  ;;  %v263_v18 = vmul.f32 1.442695, %v257_v14  ;;  %p578_p4 = pneg %p577_p11 }
  0x64   : > { %v265_v19 = vmul.f32 1.442695, %v258_v15  ;;  %v276_v30 = vsel %vm243_vm1, %v255_v12, 0.0  ;;  %v277_v31 = vsel %vm244_vm2, %v256_v13, 0.0  ;;  %v278_v36 = vsel %vm245_vm3, %v257_v14, 0.0  ;;  %p584_p12 = por %p583_p10, %p582_p7 }
  0x65   : > { %505 = vpow2.f32 %v259_v16  ;;  %v280_v34 = vsel %vm247_vm0, %v276_v30, 0.0  ;;  %v281_v35 = vsel %vm247_vm0, %v277_v31, 0.0  ;;  %v283_v38 = vsel %vm247_vm0, %v278_v36, 0.0 }
  0x66   : > { %507 = vpow2.f32 %v261_v17  ;;  %v282_v37 = vadd.f32 %v281_v35, %v280_v34  ;;  %v279_v39 = vsel %vm246_vm4, %v258_v15, 0.0  ;;  %p585_p9 = pnand %p584_p12, %p578_p4 }
  0x67   : > { %509 = vpow2.f32 %v263_v18  ;;  %v285_v41 = vsel %vm247_vm0, %v279_v39, 0.0 }
  0x68   : > { %511 = vpow2.f32 %v265_v19  ;;  %v284_v40 = vadd.f32 %v283_v38, %v282_v37 }
  0x6a   : > { %v286_v42 = vadd.f32 %v285_v41, %v284_v40 }
  0x6f   : > { %v506_v21 = vpop.eup %505 }
  0x70   : > { %v508_v22 = vpop.eup %507  ;;  %v267_v23 = vsel %vm247_vm0, %v506_v21, 0.0 }
  0x71   : > { %v510_v24 = vpop.eup %509  ;;  %v268_v25 = vsel %vm247_vm0, %v508_v22, 0.0 }
  0x72   : > { %v512_v26 = vpop.eup %511  ;;  %v269_v27 = vadd.f32 %v268_v25, %v267_v23  ;;  %v270_v28 = vsel %vm247_vm0, %v510_v24, 0.0 }
  0x73   : > { %v272_v29 = vsel %vm247_vm0, %v512_v26, 0.0 }
  0x74   : > { %v271_v32 = vadd.f32 %v270_v28, %v269_v27 }
  0x76   : > { %v273_v33 = vadd.f32 %v272_v29, %v271_v32 }
  0x78   : > { %513 = vlog2.f32 %v273_v33 }
  0x82   : > { %v514_v43 = vpop.eup %513 }
  0x83   : > { %v275_v44 = vmul.f32 0.6931472, %v514_v43 }
  0x85   : > { %v287_v45 = vsub.f32 %v286_v42, %v275_v44 }
  0x87   : > { %v288_v46 = vsub.f32 0.0, %v287_v45 }
  0x89   : > { %v290_v47 = vsel %vm247_vm0, %v288_v46, 0.0 }
  0x8a   : > { %v291_v48 = vrot.slane %v290_v47, 4 }
  0x8c   : > { %v292_v49 = vadd.f32 %v291_v48, %v290_v47 }
  0x8e   : > { %v293_v50 = vrot.slane %v292_v49, 2 }
  0x90   : > { %v294_v51 = vadd.f32 %v293_v50, %v292_v49 }
  0x92   : > { %v295_v52 = vrot.slane %v294_v51, 1 }
  0x94   : > { %v296_v54 = vadd.f32 %v295_v52, %v294_v51 }
  0x96   : > { %v297_v55 = vadd.f32 %v296_v54, %v289_v53 }
  0x98   : > { %298 = vst [vmem:[%s847_s26] sm:$0x1] %v297_v55 }
  0x99   : > { %588 = shalt.err (!%p585_p9)
}
  0x9a   : > { %s589_s16 = scalar_lea.hbm %s869_s29, 16  ;;  %s593_s4 = scalar_lea.hbm %s921_s2, 32 }
  0x9b   : > { %p590_p1 = scmp.ne.s32.totalorder %s869_s29, %s589_s16  ;;  %p594_p5 = scmp.lt.u32.totalorder %s869_s29, %s921_s2 }
  0x9c   : > { %p595_p13 = scmp.lt.u32.totalorder %s593_s4, %s589_s16  ;;  %p597_p8 = scmp.lt.u32.totalorder %s589_s16, %s869_s29 }
  0x9d   : > { %p591_p6 = pnand %p590_p1, %p933_p0 }
  0x9e   : > { %p596_p3 = por %p595_p13, %p594_p5 }
  0x9f   : > { %p592_p2 = pneg %p591_p6 }
  0xa0   : > { %p598_p11 = por %p597_p8, %p596_p3 }
  0xa2   : > { %p599_p4 = pnand %p598_p11, %p592_p2 }
  0xa4   : > { %602 = shalt.err (!%p599_p4)
}
  0xa5   : > { %439 = dma.vmem_to_hbm [thread:$0]  (%p933_p0), %s871_s30, 16, %s869_s29, %s300_s3  }
  0xa6 PF: > { %s325_s15 = sand.u32 1, %s641_s9   ;;  %p934_p7 = scmp.ne.s32.totalorder %s927_s24, 0 }
  0xa7   : > { %p935_p10 = scmp.ge.s32.totalorder %s661_s14, 2  ;;  %s326_s19 = scalar_lea.sflag [#allocation4], %s325_s15 }
  0xa9   : > { %p449_p12 = pnand %p935_p10, %p934_p7 }
  0xab   : > { %636 = dma.done.wait (!%p449_p12), %s326_s19, 16  }
  0xac   : > { %638 = vsyncadd (!%p449_p12), %s326_s19, 4294967280  ;;  %s21_s14 = sadd.s32 1, %s661_s14   ;;  %s936_s9 = smov %s645_s10 }
  0xad   : > { %p18_p9 = scmp.ge.s32.totalorder %s21_s14, 4   ;;  %s937_s10 = smov %s649_s11 }
  0xae   : > { %s938_s11 = smov %s740_s23  ;;  %s939_s12 = smov %s657_s13 }
  0xaf   : > { %s940_s13 = smov %s942_s17  ;;  %20 = sbr.rel (!%p18_p9) target bundleno = 8 (0x8), region = 90 }
  0xb6   :  { %330 = vsyncpa [#allocation3], 1 }
  0xb7   :  { %332 = vsyncpa [#allocation3 + $0x1], 1 }
  0xb8   :  { %333 = vsyncpa [#allocation6], 1 }
  0xb9   :  { %335 = vsyncpa [#allocation6 + $0x1], 1 }
  0xba   :  { %336 = vsyncpa [#allocation4], 1 }
  0xbb   :  { %338 = vsyncpa [#allocation4 + $0x1], 1 }

</bundles_post_ra>
